<compile_context>
chip_gen: v6e
topology: v6e:2x2x1
jax: 0.10.0
libtpu: 0.0.40
codegen_flags: <defaults>
</compile_context>

<pallas_src>
from functools import partial

import jax
import jax.numpy as jnp
from jax.experimental import pallas as pl

LEAKY_SLOPE = 0.01   # F.leaky_relu default negative_slope
BN_EPS = 1e-5        # nn.BatchNorm1d default eps


def _leaky_relu(x):
    return jnp.where(x > 0, x, LEAKY_SLOPE * x)


def _critic_kernel(x_ref, p_ref, out_ref, *, d_in, h1, h2):
    """Whole forward pass for one (small) batch tile resident in VMEM.

    x_ref : (B, S+A) f32 activations (state || action, concatenated in wrapper)
    p_ref : (S+A + 3 + H1 + 3, Hmax) f32 packed parameter slab with rows
              [0, d_in)                : w1            (d_in, H1)
              [d_in, d_in+3)           : b1, gamma1, beta1
              [d_in+3, d_in+3+h1)      : w2            (H1, H2)
              [d_in+3+h1, d_in+6+h1)   : b2, wq_row, bq (bq in lane 0)
    """
    x = x_ref[...]

    # Static pl.ds row slices into the packed slab -> simple strided loads.
    r = 0
    w1 = p_ref[pl.ds(r, d_in), pl.ds(0, h1)]
    r += d_in
    b1 = p_ref[pl.ds(r, 1), pl.ds(0, h1)]
    g1 = p_ref[pl.ds(r + 1, 1), pl.ds(0, h1)]
    be1 = p_ref[pl.ds(r + 2, 1), pl.ds(0, h1)]
    r += 3
    w2 = p_ref[pl.ds(r, h1), pl.ds(0, h2)]
    r += h1
    b2 = p_ref[pl.ds(r, 1), pl.ds(0, h2)]
    wq = p_ref[pl.ds(r + 1, 1), pl.ds(0, h2)]
    bq = p_ref[pl.ds(r + 2, 1), pl.ds(0, 1)]           # (1, 1) scalar bias

    # fc1: single K = S+A matmul (one MXU push/drain) + leaky_relu.
    h = jnp.dot(x, w1, preferred_element_type=jnp.float32) + b1
    h = _leaky_relu(h)

    # BatchNorm1d (training-mode batch stats), folded into one scale/shift.
    mean = jnp.mean(h, axis=0, keepdims=True)
    c = h - mean                                        # hoisted, reused
    var = jnp.mean(c * c, axis=0, keepdims=True)        # biased variance
    scale = g1 * jax.lax.rsqrt(var + BN_EPS)            # (1, H1)
    h = c * scale + be1                                 # one FMA-style pass

    # fc2 + leaky_relu
    h = jnp.dot(h, w2, preferred_element_type=jnp.float32) + b2
    h = _leaky_relu(h)

    # q_out (H2 -> 1): VPU multiply + lane reduction instead of an N=1 matmul.
    q = jnp.sum(h * wq, axis=-1, keepdims=True) + bq
    out_ref[...] = q.astype(out_ref.dtype)


def pack_params(params):
    """One-time repack of all parameters into a single contiguous f32 slab.

    Collapses 5 parameter tensors into one (d_in + 3 + H1 + 3, Hmax) array so
    the kernel sees a single input DMA. Rows narrower than Hmax are zero-padded
    on the lane axis (no padding occurs when H1 == H2).
    """
    w1 = params["w1"].astype(jnp.float32)               # (d_in, H1)
    w2 = params["w2"].astype(jnp.float32)               # (H1, H2)
    wq = params["wq"].astype(jnp.float32)               # (H2, 1)
    assert wq.shape[1] == 1, "q_out projection is specialized to output_dim == 1"
    h1 = w1.shape[1]
    h2 = w2.shape[1]
    hmax = max(h1, h2)

    def pad(m):
        m = m.astype(jnp.float32)
        return jnp.pad(m, ((0, 0), (0, hmax - m.shape[1])))

    bq_row = jnp.zeros((1, h2), jnp.float32).at[0, 0].set(params["bq"][0, 0])
    slab = jnp.concatenate(
        [
            pad(w1),
            pad(params["b1"]), pad(params["gamma1"]), pad(params["beta1"]),
            pad(w2),
            pad(params["b2"]), pad(wq.T), pad(bq_row),
        ],
        axis=0,
    )
    return slab                                          # (d_in + 6 + H1, Hmax)


@partial(jax.jit, static_argnames=("h1", "h2"))
def critic_forward(state_all, action_all, param_slab, *, h1, h2):
    """Pallas-backed Critic forward. Returns (B, 1) Q-values (f32)."""
    B, S = state_all.shape
    _, A = action_all.shape
    d_in = S + A
    x = jnp.concatenate([state_all, action_all], axis=1).astype(jnp.float32)
    rows, hmax = param_slab.shape

    flops = 2 * B * d_in * h1 + 2 * B * h1 * h2 + 2 * B * h2
    bytes_accessed = 4 * (B * d_in + rows * hmax + B * 1)

    kernel = partial(_critic_kernel, d_in=d_in, h1=h1, h2=h2)
    full = lambda shape: pl.BlockSpec(shape, lambda: (0,) * len(shape))
    return pl.pallas_call(
        kernel,
        out_shape=jax.ShapeDtypeStruct((B, 1), jnp.float32),
        in_specs=[full((B, d_in)), full((rows, hmax))],
        out_specs=full((B, 1)),
        cost_estimate=pl.CostEstimate(
            flops=flops, transcendentals=0, bytes_accessed=bytes_accessed),
    )(x, param_slab)


def init_params(key, state_dim, action_dim, hidden_dim, output_dim):
    """Deterministic init mirroring Critic.reset_parameters (shapes only).

    Note: the reference `hidden_init` uses weight.size()[0] (== out_features)
    as "fan_in"; we reproduce that limit.
    """
    d_in = state_dim + action_dim
    h1, h2 = hidden_dim
    ks = jax.random.split(key, 6)

    lim1 = 1.0 / jnp.sqrt(jnp.float32(h1))          # fc1: weight.size()[0] == h1
    lim2 = 1.0 / jnp.sqrt(jnp.float32(h2))          # fc2: weight.size()[0] == h2
    blim1 = 1.0 / jnp.sqrt(jnp.float32(d_in))       # torch default bias init bound
    blim2 = 1.0 / jnp.sqrt(jnp.float32(h1))
    blimq = 1.0 / jnp.sqrt(jnp.float32(h2))

    return {
        "w1": jax.random.uniform(ks[0], (d_in, h1), jnp.float32, -lim1, lim1),
        "b1": jax.random.uniform(ks[1], (1, h1), jnp.float32, -blim1, blim1),
        "gamma1": jnp.ones((1, h1), jnp.float32),   # BatchNorm1d affine init
        "beta1": jnp.zeros((1, h1), jnp.float32),
        "w2": jax.random.uniform(ks[2], (h1, h2), jnp.float32, -lim2, lim2),
        "b2": jax.random.uniform(ks[3], (1, h2), jnp.float32, -blim2, blim2),
        "wq": jax.random.uniform(ks[4], (h2, output_dim), jnp.float32, -0.003, 0.003),
        "bq": jax.random.uniform(ks[5], (1, output_dim), jnp.float32, -blimq, blimq),
    }


def _reference_forward(state_all, action_all, p):
    """Pure-JAX reference for correctness check."""
    x = jnp.concatenate([state_all, action_all], axis=1)
    h1 = _leaky_relu(x @ p["w1"] + p["b1"])
    mean = jnp.mean(h1, axis=0, keepdims=True)
    var = jnp.mean((h1 - mean) ** 2, axis=0, keepdims=True)
    h1 = (h1 - mean) / jnp.sqrt(var + BN_EPS) * p["gamma1"] + p["beta1"]
    h2 = _leaky_relu(h1 @ p["w2"] + p["b2"])
    return h2 @ p["wq"] + p["bq"]


if __name__ == "__main__":
    # Small shapes: batch=8, state_dim=24, action_dim=8, hidden=[64, 64], out=1
    B, S_DIM, A_DIM = 8, 24, 8
    HIDDEN = [64, 64]
    OUT = 1

    key = jax.random.PRNGKey(0)
    k_s, k_a, k_p = jax.random.split(key, 3)
    state_all = jax.random.normal(k_s, (B, S_DIM), jnp.float32)
    action_all = jax.random.normal(k_a, (B, A_DIM), jnp.float32)
    params = init_params(k_p, S_DIM, A_DIM, HIDDEN, OUT)

    q_ref = _reference_forward(state_all, action_all, params)

    param_slab = pack_params(params)
    q = jax.block_until_ready(
        critic_forward(state_all, action_all, param_slab,
                       h1=HIDDEN[0], h2=HIDDEN[1]))
    assert q.shape == (B, OUT), q.shape
    assert jnp.allclose(q, q_ref, atol=1e-5, rtol=1e-5), (q, q_ref)

    print("KERNEL_OK")
</pallas_src>

<mosaic_0001>
module attributes {stable_mosaic.version = 11 : i64} {
  func.func @_critic_kernel(%arg0: memref<8x32xf32, #tpu.memory_space<vmem>>, %arg1: memref<102x64xf32, #tpu.memory_space<vmem>>, %arg2: memref<8x1xf32, #tpu.memory_space<vmem>>) attributes {dimension_semantics = [], scalar_prefetch = 0 : i64, scratch_operands = 0 : i64, tpu.core_type = #tpu.core_type<tc>} {
    %c0 = arith.constant 0 : index
    %c0_0 = arith.constant 0 : index
    %0 = vector.load %arg0[%c0, %c0_0] : memref<8x32xf32, #tpu.memory_space<vmem>>, vector<8x32xf32>
    %c0_1 = arith.constant 0 : index
    %c0_2 = arith.constant 0 : index
    %1 = vector.load %arg1[%c0_1, %c0_2] : memref<102x64xf32, #tpu.memory_space<vmem>>, vector<32x64xf32>
    %c32 = arith.constant 32 : index
    %c0_3 = arith.constant 0 : index
    %2 = vector.load %arg1[%c32, %c0_3] : memref<102x64xf32, #tpu.memory_space<vmem>>, vector<1x64xf32>
    %c33 = arith.constant 33 : index
    %c0_4 = arith.constant 0 : index
    %3 = vector.load %arg1[%c33, %c0_4] : memref<102x64xf32, #tpu.memory_space<vmem>>, vector<1x64xf32>
    %c34 = arith.constant 34 : index
    %c0_5 = arith.constant 0 : index
    %4 = vector.load %arg1[%c34, %c0_5] : memref<102x64xf32, #tpu.memory_space<vmem>>, vector<1x64xf32>
    %c35 = arith.constant 35 : index
    %c0_6 = arith.constant 0 : index
    %5 = vector.load %arg1[%c35, %c0_6] : memref<102x64xf32, #tpu.memory_space<vmem>>, vector<64x64xf32>
    %c99 = arith.constant 99 : index
    %c0_7 = arith.constant 0 : index
    %6 = vector.load %arg1[%c99, %c0_7] : memref<102x64xf32, #tpu.memory_space<vmem>>, vector<1x64xf32>
    %c100 = arith.constant 100 : index
    %c0_8 = arith.constant 0 : index
    %7 = vector.load %arg1[%c100, %c0_8] : memref<102x64xf32, #tpu.memory_space<vmem>>, vector<1x64xf32>
    %c101 = arith.constant 101 : index
    %c0_9 = arith.constant 0 : index
    %8 = vector.load %arg1[%c101, %c0_9] : memref<102x64xf32, #tpu.memory_space<vmem>>, vector<1x1xf32>
    %cst = arith.constant dense<0.000000e+00> : vector<8x64xf32>
    %9 = tpu.matmul %0, %1, %cst {dimension_numbers = #tpu.dot_dimension_numbers<[1], [0], [0], [1], [0, 0, 1, 1], [], []>} : vector<8x32xf32>, vector<32x64xf32>, vector<8x64xf32> -> vector<8x64xf32>
    %10 = vector.broadcast %2 : vector<1x64xf32> to vector<8x64xf32>
    %11 = arith.addf %9, %10 : vector<8x64xf32>
    %cst_10 = arith.constant 0.000000e+00 : f32
    %12 = vector.broadcast %cst_10 : f32 to vector<8x64xf32>
    %13 = arith.cmpf ogt, %11, %12 : vector<8x64xf32>
    %cst_11 = arith.constant 0.00999999977 : f32
    %14 = vector.broadcast %cst_11 : f32 to vector<8x64xf32>
    %15 = arith.mulf %14, %11 : vector<8x64xf32>
    %16 = arith.select %13, %11, %15 : vector<8x64xi1>, vector<8x64xf32>
    %cst_12 = arith.constant dense<0.000000e+00> : vector<64xf32>
    %17 = vector.multi_reduction <add>, %16, %cst_12 [0] : vector<8x64xf32> to vector<64xf32>
    %18 = vector.shape_cast %17 : vector<64xf32> to vector<1x64xf32>
    %cst_13 = arith.constant 8.000000e+00 : f32
    %19 = vector.broadcast %cst_13 : f32 to vector<1x64xf32>
    %20 = arith.divf %18, %19 : vector<1x64xf32>
    %21 = vector.broadcast %20 : vector<1x64xf32> to vector<8x64xf32>
    %22 = arith.subf %16, %21 : vector<8x64xf32>
    %23 = arith.mulf %22, %22 : vector<8x64xf32>
    %cst_14 = arith.constant dense<0.000000e+00> : vector<64xf32>
    %24 = vector.multi_reduction <add>, %23, %cst_14 [0] : vector<8x64xf32> to vector<64xf32>
    %25 = vector.shape_cast %24 : vector<64xf32> to vector<1x64xf32>
    %cst_15 = arith.constant 8.000000e+00 : f32
    %26 = vector.broadcast %cst_15 : f32 to vector<1x64xf32>
    %27 = arith.divf %25, %26 : vector<1x64xf32>
    %cst_16 = arith.constant 9.99999974E-6 : f32
    %28 = vector.broadcast %cst_16 : f32 to vector<1x64xf32>
    %29 = arith.addf %27, %28 : vector<1x64xf32>
    %30 = math.rsqrt %29 : vector<1x64xf32>
    %31 = arith.mulf %3, %30 : vector<1x64xf32>
    %32 = vector.broadcast %31 : vector<1x64xf32> to vector<8x64xf32>
    %33 = arith.mulf %22, %32 : vector<8x64xf32>
    %34 = vector.broadcast %4 : vector<1x64xf32> to vector<8x64xf32>
    %35 = arith.addf %33, %34 : vector<8x64xf32>
    %cst_17 = arith.constant dense<0.000000e+00> : vector<8x64xf32>
    %36 = tpu.matmul %35, %5, %cst_17 {dimension_numbers = #tpu.dot_dimension_numbers<[1], [0], [0], [1], [0, 0, 1, 1], [], []>} : vector<8x64xf32>, vector<64x64xf32>, vector<8x64xf32> -> vector<8x64xf32>
    %37 = vector.broadcast %6 : vector<1x64xf32> to vector<8x64xf32>
    %38 = arith.addf %36, %37 : vector<8x64xf32>
    %cst_18 = arith.constant 0.000000e+00 : f32
    %39 = vector.broadcast %cst_18 : f32 to vector<8x64xf32>
    %40 = arith.cmpf ogt, %38, %39 : vector<8x64xf32>
    %cst_19 = arith.constant 0.00999999977 : f32
    %41 = vector.broadcast %cst_19 : f32 to vector<8x64xf32>
    %42 = arith.mulf %41, %38 : vector<8x64xf32>
    %43 = arith.select %40, %38, %42 : vector<8x64xi1>, vector<8x64xf32>
    %44 = vector.broadcast %7 : vector<1x64xf32> to vector<8x64xf32>
    %45 = arith.mulf %43, %44 : vector<8x64xf32>
    %cst_20 = arith.constant dense<0.000000e+00> : vector<8xf32>
    %46 = vector.multi_reduction <add>, %45, %cst_20 [1] : vector<8x64xf32> to vector<8xf32>
    %47 = vector.shape_cast %46 : vector<8xf32> to vector<8x1xf32>
    %48 = vector.broadcast %8 : vector<1x1xf32> to vector<8x1xf32>
    %49 = arith.addf %47, %48 : vector<8x1xf32>
    %c0_21 = arith.constant 0 : index
    %c0_22 = arith.constant 0 : index
    %50 = vector.load %arg2[%c0_21, %c0_22] : memref<8x1xf32, #tpu.memory_space<vmem>>, vector<8x1xf32>
    tpu.vector_store %arg2[%c0_21, %c0_22], %49 {strides = array<i32>} : memref<8x1xf32, #tpu.memory_space<vmem>>, vector<8x1xf32>,
    return
  }
}

</mosaic_0001>

<bundles_post_ra>
// kernel: critic_forward.1
= control target key start
LH: loop header
LB: loop body
LE: loop exit
PB: predicated region body
PF: predicated region fallthrough
CT: control target
= control target key end

     0   :  { %v298_v0 = vmov 0.0   ;;  %vm299_vm0 = vmmov 0   ;;  %vm34_vm1 = vcmask 261120   ;;  %vm111_vm3 = vcmask 523264   ;;  %s379_s1 = inlined_call_operand.vmem [shape: f32[102,64], index: 1, kind: input, shape index: {}]   ;;  %s380_s0 = inlined_call_operand.vmem [shape: f32[8,32], index: 0, kind: input, shape index: {}]   ;;  %s381_s2 = inlined_call_operand.vmem [shape: f32[8,1], index: 2, kind: output, shape index: {}]  }
   0x1   :  { %264 = vmatprep.subr.mxu0 %v298_v0  ;;  %v15_v1 = vld [vmem:[%s379_s1 + $0x18] sm:$0xff]  ;;  %v14_v2 = vld [vmem:[%s379_s1 + $0x10] sm:$0xff]  ;;  %272 = vmatprep.mubr.msk.f32.mxu0 %vm299_vm0, %v298_v0  ;;  %v13_v3 = vld [vmem:[%s379_s1 + $0x8] sm:$0xff]  ;;  %v134_v39 = vlaneseq  ;;  %vm237_vm5 = vcmask 7168  }
   0x2   :  { %265 = vmatpush3.msra.mxu0 %v15_v1  ;;  %275 = vmatprep.subr.mxu1 %v298_v0  ;;  %v12_v4 = vld [vmem:[%s379_s1] sm:$0xff]  ;;  %v25_v7 = vld [vmem:[%s379_s1 + $0x53] sm:$0xff]  ;;  %v24_v8 = vld [vmem:[%s379_s1 + $0x4b] sm:$0xff] }
   0x3   :  { %266 = vmatprep.subr.mxu0 %v298_v0  ;;  %291 = vmatprep.mubr.msk.f32.mxu1 %vm299_vm0, %v298_v0  ;;  %v11_v5 = vld [vmem:[%s380_s0] sm:$0xff]  ;;  %v21_v11 = vld [vmem:[%s379_s1 + $0x33] sm:$0xff]  ;;  %v20_v12 = vld [vmem:[%s379_s1 + $0x2b] sm:$0xff]  ;;  %v135_v40 = vshrl.u32 %v134_v39, 7 }
   0x4   :  { %267 = vmatpush3.msra.mxu0 %v14_v2  ;;  %v26_v6 = vld [vmem:[%s379_s1 + $0x5b] sm:$0xff]  ;;  %v23_v9 = vld [vmem:[%s379_s1 + $0x43] sm:$0xff] }
   0x5   :  { %268 = vmatprep.subr.mxu0 %v298_v0  ;;  %276 = vmatpush3.msra.mxu1 %v26_v6  ;;  %v22_v10 = vld [vmem:[%s379_s1 + $0x3b] sm:$0xff]  ;;  %v19_v13 = vld [vmem:[%s379_s1 + $0x23] sm:$0xff]  ;;  %v136_v42 = vsub.s32 0, %v135_v40 }
   0x6   :  { %269 = vmatpush3.msra.mxu0 %v13_v3  ;;  %277 = vmatprep.subr.mxu1 %v298_v0  ;;  %v243_v14 = vld [vmem:[%s379_s1 + $0x20] ss:$0 sm:$0xff]  ;;  %v17_v41 = vld [vmem:[%s379_s1 + $0x21] sm:$0x1]  ;;  %v245_v46 = vld [vmem:[%s379_s1 + $0x22] ss:$0 sm:$0xff] }
   0x7   :  { %270 = vmatprep.subr.mxu0 %v298_v0  ;;  %278 = vmatpush3.msra.mxu1 %v25_v7  ;;  %v246_v49 = vld [vmem:[%s379_s1 + $0x63] ss:$0 sm:$0xff]  ;;  %v248_v54 = vld [vmem:[%s379_s1 + $0x64] ss:$0 sm:$0xff]  ;;  %v249_v58 = vld [vmem:[%s379_s1 + $0x65] ss:$0 sm:$0xff] }
   0x8   :  { %271 = vmatpush3.msra.mxu0 %v12_v4  ;;  %279 = vmatprep.subr.mxu1 %v298_v0 }
   0x9   :  { %273 = vmatmul.mubr.msk.f32.vlgmr.msra.gmra.mxu0 %vm34_vm1, %v11_v5  ;;  %280 = vmatpush3.msra.mxu1 %v24_v8 }
   0xa   :  { %281 = vmatprep.subr.mxu1 %v298_v0 }
   0xb   :  { %282 = vmatpush3.msra.mxu1 %v23_v9 }
   0xc   :  { %283 = vmatprep.subr.mxu1 %v298_v0 }
   0xd   :  { %284 = vmatpush3.msra.mxu1 %v22_v10 }
   0xe   :  { %285 = vmatprep.subr.mxu1 %v298_v0 }
   0xf   :  { %286 = vmatpush3.msra.mxu1 %v21_v11 }
  0x10   :  { %287 = vmatprep.subr.mxu1 %v298_v0 }
  0x11   :  { %288 = vmatpush3.msra.mxu1 %v20_v12 }
  0x12   :  { %289 = vmatprep.subr.mxu1 %v298_v0 }
  0x13   :  { %290 = vmatpush3.msra.mxu1 %v19_v13 }
  0xc9   :  { %v104_v15 = vpop.f32.mrf.mxu0 }
  0xca   :  { %v105_v16 = vadd.f32 %v243_v14, %v104_v15 }
  0xcb   :  { %v274_v17 = vpop.f32.mrf.mxu0 }
  0xcc   :  { %vm108_vm2 = vcmp.gt.f32.partialorder %v105_v16, 0.0  ;;  %v109_v18 = vmul.f32 0.01, %v105_v16 }
  0xce   :  { %v110_v19 = vsel %vm108_vm2, %v105_v16, %v109_v18 }
  0xcf   :  { %v112_v20 = vsel %vm111_vm3, %v110_v19, 0.0 }
  0xd0   :  { %v113_v21 = vrot.slane %v112_v20, 4 }
  0xd2   :  { %v114_v22 = vadd.f32 %v113_v21, %v112_v20 }
  0xd4   :  { %v115_v23 = vrot.slane %v114_v22, 2 }
  0xd6   :  { %v116_v24 = vadd.f32 %v115_v23, %v114_v22 }
  0xd8   :  { %v117_v25 = vrot.slane %v116_v24, 1 }
  0xda   :  { %v118_v26 = vadd.f32 %v117_v25, %v116_v24 }
  0xdc   :  { %v120_v27 = vmul.f32 0.125, %v118_v26 }
  0xde   :  { %v121_v28 = vsub.f32 %v110_v19, %v120_v27 }
  0xe0   :  { %v122_v29 = vmul.f32 %v121_v28, %v121_v28 }
  0xe2   :  { %v123_v30 = vsel %vm111_vm3, %v122_v29, 0.0 }
  0xe3   :  { %v124_v31 = vrot.slane %v123_v30, 4 }
  0xe5   :  { %v125_v32 = vadd.f32 %v124_v31, %v123_v30 }
  0xe7   :  { %v126_v33 = vrot.slane %v125_v32, 2 }
  0xe9   :  { %v127_v34 = vadd.f32 %v126_v33, %v125_v32 }
  0xeb   :  { %v128_v35 = vrot.slane %v127_v34, 1 }
  0xed   :  { %v129_v36 = vadd.f32 %v128_v35, %v127_v34 }
  0xef   :  { %v130_v37 = vmul.f32 0.125, %v129_v36 }
  0xf1   :  { %v131_v38 = vadd.f32 1e-05, %v130_v37 }
  0xf3   :  { %296 = vrsqrt.f32 %v131_v38 }
 0x100   :  { %v297_v43 = vpop.eup %296 }
 0x101   :  { %v133_v44 = vmul.f32 %v297_v43, %v17_v41 }
 0x103   :  { %v137_v45 = vrot.slane %v133_v44, %v136_v42 }
 0x105   :  { %v138_v47 = vmul.f32 %v137_v45, %v121_v28 }
 0x107   :  { %v143_v48 = vadd.f32 %v245_v46, %v138_v47 }
 0x109   :  { %292 = vmatmul.mubr.msk.f32.vlgmr.msra.gmra.mxu1 %vm111_vm3, %v143_v48 }
 0x1c9   :  { %v217_v50 = vpop.f32.mrf.mxu1 }
 0x1ca   :  { %v218_v51 = vadd.f32 %v246_v49, %v217_v50 }
 0x1cb   :  { %v293_v52 = vpop.f32.mrf.mxu1 }
 0x1cc   :  { %v222_v53 = vmul.f32 0.01, %v218_v51  ;;  %vm221_vm4 = vcmp.gt.f32.partialorder %v218_v51, 0.0 }
 0x1ce   :  { %v223_v55 = vsel %vm221_vm4, %v218_v51, %v222_v53 }
 0x1cf   :  { %v228_v56 = vmul.f32 %v248_v54, %v223_v55 }
 0x1d1   :  { %v229_v57 = vsel %vm111_vm3, %v228_v56, 0.0 }
 0x1d2   :  { %230 = vadd.xlane.f32.xlu0 %v229_v57 }
 0x25b   :  { %v231_v59 = vpop.xlane.xlu0 %230 }
 0x25c   :  { %v236_v60 = vadd.f32 %v249_v58, %v231_v59 }
 0x25e   :  { %238 = vst.msk [vmem:[%s381_s2] sm:$0xff] %vm237_vm5, %v236_v60 }

</bundles_post_ra>
